<compile_context>
chip_gen: v5e
topology: v5e:2x2
jax: 0.10.0
libtpu: 0.0.40
codegen_flags: <defaults>
</compile_context>

<pallas_src>
import functools

import jax
import jax.numpy as jnp
from jax.experimental import pallas as pl
from jax.experimental.pallas import tpu as pltpu

LANES = 128
SUBLANES = 8
MAX_BLOCK_ROWS = 2048   # (2048,128) f32 tile = 1 MiB; 2 inputs x 2 buffers = 4 MiB VMEM
N_SPLIT = 2             # leading "parallel" grid axis (both TCs on v7x)
PAD_LOGIT = -100.0      # exp(-100) underflows in f32 -> padded elems contribute 0


def _round_up(x, m):
    return ((x + m - 1) // m) * m


def _focal_kernel(alpha, gamma, block_rows, p_ref, t_ref, acc_ref):
    """Accumulate per-core partial sums into acc_ref (block (2, 8, 128)).

    acc_ref[0] accumulates the BCE terms, acc_ref[1] the focal weights. The
    output block stays resident across the "arbitrary" reduction axis.
    """
    i = pl.program_id(1)

    @pl.when(i == 0)
    def _():
        acc_ref[...] = jnp.zeros_like(acc_ref)

    x = p_ref[...].astype(jnp.float32)
    t = t_ref[...].astype(jnp.float32)

    # One EUP exp, reused for both the stable BCE log-term and the sigmoid.
    e = jnp.exp(-jnp.abs(x))
    # BCEWithLogits (numerically stable): max(x,0) - x*t + log(1 + exp(-|x|))
    bce = jnp.maximum(x, 0.0) - x * t + jnp.log1p(e)
    # sigmoid(x) derived from e. Exact reciprocal (not approx) keeps the result
    # tight against the reference; this kernel is HBM-bound anyway.
    r = 1.0 / (1.0 + e)
    prob = jnp.where(x >= 0.0, r, e * r)

    one_m_p = 1.0 - prob
    if gamma == 2.0:
        pos_w = one_m_p * one_m_p
        neg_w = prob * prob
    else:
        pos_w = one_m_p ** gamma
        neg_w = prob ** gamma
    w = t * alpha * pos_w + (1.0 - t) * neg_w

    # Reduce (block_rows, 128) -> (8, 128) with pure VPU vreg adds (sum over
    # whole sublane groups); the final cross-lane reduce happens in the wrapper.
    g = block_rows // SUBLANES
    acc_ref[0] += bce.reshape(g, SUBLANES, LANES).sum(axis=0)
    acc_ref[1] += w.reshape(g, SUBLANES, LANES).sum(axis=0)


def bce_focal_loss(preds, targets, alpha=0.25, gamma=2.0):
    """Pallas TPU implementation of BCEFocalLoss.forward. Returns a scalar f32."""
    assert preds.shape == targets.shape
    n = preds.size

    rows = max(1, -(-n // LANES))
    block_rows = min(MAX_BLOCK_ROWS, _round_up(rows, SUBLANES))
    rows_pad = _round_up(rows, N_SPLIT * block_rows)
    pad = rows_pad * LANES - n

    # Pad with a huge negative logit / zero target: both the BCE term and the
    # focal weight are (effectively exactly) 0 there, so no in-kernel mask.
    p2 = jnp.pad(preds.reshape(-1), (0, pad),
                 constant_values=PAD_LOGIT).reshape(rows_pad, LANES)
    t2 = jnp.pad(targets.reshape(-1), (0, pad),
                 constant_values=0.0).reshape(rows_pad, LANES)

    tiles_per_split = rows_pad // (N_SPLIT * block_rows)
    grid = (N_SPLIT, tiles_per_split)

    in_spec = pl.BlockSpec((block_rows, LANES),
                           lambda c, i: (c * tiles_per_split + i, 0))
    out_spec = pl.BlockSpec((2, SUBLANES, LANES), lambda c, i: (c, 0, 0))

    partials = pl.pallas_call(
        functools.partial(_focal_kernel, float(alpha), float(gamma), block_rows),
        out_shape=jax.ShapeDtypeStruct((N_SPLIT * 2, SUBLANES, LANES), jnp.float32),
        grid_spec=pltpu.PrefetchScalarGridSpec(
            num_scalar_prefetch=0,
            grid=grid,
            in_specs=[in_spec, in_spec],
            out_specs=out_spec,
        ),
        compiler_params=pltpu.CompilerParams(
            dimension_semantics=("parallel", "arbitrary"),
        ),
    )(p2, t2)

    partials = partials.reshape(N_SPLIT, 2, SUBLANES, LANES)
    bce_sum = jnp.sum(partials[:, 0])
    w_sum = jnp.sum(partials[:, 1])
    return bce_sum * w_sum


def _reference(preds, targets, alpha=0.25, gamma=2.0):
    x = preds.astype(jnp.float32)
    t = targets.astype(jnp.float32)
    bce = jnp.sum(jnp.maximum(x, 0.0) - x * t + jnp.log1p(jnp.exp(-jnp.abs(x))))
    p = jax.nn.sigmoid(x)
    loss = t * alpha * (1.0 - p) ** gamma * bce + (1.0 - t) * p ** gamma * bce
    return jnp.sum(loss)


if __name__ == "__main__":
    key = jax.random.PRNGKey(0)
    k1, k2 = jax.random.split(key)
    # Small shapes consistent with an NCHW segmentation-style head.
    shape = (2, 4, 16, 16)
    preds = jax.random.normal(k1, shape, dtype=jnp.float32)
    targets = (jax.random.uniform(k2, shape) > 0.5).astype(jnp.float32)

    loss = jax.jit(bce_focal_loss)(preds, targets)
    jax.block_until_ready(loss)

    ref = _reference(preds, targets)
    assert jnp.allclose(loss, ref, rtol=1e-4, atol=1e-2), (loss, ref)
    print("KERNEL_OK")
</pallas_src>

<mosaic_0001>
module attributes {stable_mosaic.version = 11 : i64} {
  func.func @_focal_kernel(%arg0: i32, %arg1: i32, %arg2: memref<16x128xf32, #tpu.memory_space<vmem>>, %arg3: memref<16x128xf32, #tpu.memory_space<vmem>>, %arg4: memref<2x8x128xf32, #tpu.memory_space<vmem>>) attributes {dimension_semantics = [#tpu.dimension_semantics<parallel>, #tpu.dimension_semantics<arbitrary>], iteration_bounds = array<i64: 2, 1>, scalar_prefetch = 0 : i64, scratch_operands = 0 : i64, tpu.core_type = #tpu.core_type<tc>, window_params = [{transform_indices = @transform_0, window_bounds = array<i64: 16, 128>}, {transform_indices = @transform_1, window_bounds = array<i64: 16, 128>}, {transform_indices = @transform_2, window_bounds = array<i64: 2, 8, 128>}]} {
    %c0_i32 = arith.constant 0 : i32
    %0 = arith.cmpi eq, %arg1, %c0_i32 : i32
    %1 = arith.extui %0 : i1 to i32
    %c0_i32_0 = arith.constant 0 : i32
    %2 = arith.cmpi ne, %1, %c0_i32_0 : i32
    scf.if %2 {
      %cst_24 = arith.constant 0.000000e+00 : f32
      %50 = vector.broadcast %cst_24 : f32 to vector<2x8x128xf32>
      %c0_25 = arith.constant 0 : index
      %c0_26 = arith.constant 0 : index
      %c0_27 = arith.constant 0 : index
      %51 = vector.load %arg4[%c0_25, %c0_26, %c0_27] : memref<2x8x128xf32, #tpu.memory_space<vmem>>, vector<2x8x128xf32>
      tpu.vector_store %arg4[%c0_25, %c0_26, %c0_27], %50 {strides = array<i32>} : memref<2x8x128xf32, #tpu.memory_space<vmem>>, vector<2x8x128xf32>,
    } else {
    }
    %c0 = arith.constant 0 : index
    %c0_1 = arith.constant 0 : index
    %3 = vector.load %arg2[%c0, %c0_1] : memref<16x128xf32, #tpu.memory_space<vmem>>, vector<16x128xf32>
    %c0_2 = arith.constant 0 : index
    %c0_3 = arith.constant 0 : index
    %4 = vector.load %arg3[%c0_2, %c0_3] : memref<16x128xf32, #tpu.memory_space<vmem>>, vector<16x128xf32>
    %5 = math.absf %3 : vector<16x128xf32>
    %cst = arith.constant 0.000000e+00 : f32
    %6 = vector.broadcast %cst : f32 to vector<16x128xf32>
    %7 = arith.subf %6, %5 : vector<16x128xf32>
    %8 = math.exp %7 : vector<16x128xf32>
    %cst_4 = arith.constant 0.000000e+00 : f32
    %9 = vector.broadcast %cst_4 : f32 to vector<16x128xf32>
    %10 = arith.maximumf %3, %9 : vector<16x128xf32>
    %11 = arith.mulf %3, %4 : vector<16x128xf32>
    %12 = arith.subf %10, %11 : vector<16x128xf32>
    %13 = math.log1p %8 : vector<16x128xf32>
    %14 = arith.addf %12, %13 : vector<16x128xf32>
    %cst_5 = arith.constant 1.000000e+00 : f32
    %15 = vector.broadcast %cst_5 : f32 to vector<16x128xf32>
    %16 = arith.addf %15, %8 : vector<16x128xf32>
    %cst_6 = arith.constant 1.000000e+00 : f32
    %17 = vector.broadcast %cst_6 : f32 to vector<16x128xf32>
    %18 = arith.divf %17, %16 : vector<16x128xf32>
    %cst_7 = arith.constant 0.000000e+00 : f32
    %19 = vector.broadcast %cst_7 : f32 to vector<16x128xf32>
    %20 = arith.cmpf oge, %3, %19 : vector<16x128xf32>
    %21 = arith.mulf %8, %18 : vector<16x128xf32>
    %22 = arith.select %20, %18, %21 : vector<16x128xi1>, vector<16x128xf32>
    %cst_8 = arith.constant 1.000000e+00 : f32
    %23 = vector.broadcast %cst_8 : f32 to vector<16x128xf32>
    %24 = arith.subf %23, %22 : vector<16x128xf32>
    %25 = arith.mulf %24, %24 : vector<16x128xf32>
    %26 = arith.mulf %22, %22 : vector<16x128xf32>
    %cst_9 = arith.constant 2.500000e-01 : f32
    %27 = vector.broadcast %cst_9 : f32 to vector<16x128xf32>
    %28 = arith.mulf %4, %27 : vector<16x128xf32>
    %29 = arith.mulf %28, %25 : vector<16x128xf32>
    %cst_10 = arith.constant 1.000000e+00 : f32
    %30 = vector.broadcast %cst_10 : f32 to vector<16x128xf32>
    %31 = arith.subf %30, %4 : vector<16x128xf32>
    %32 = arith.mulf %31, %26 : vector<16x128xf32>
    %33 = arith.addf %29, %32 : vector<16x128xf32>
    %c0_11 = arith.constant 0 : index
    %c0_12 = arith.constant 0 : index
    %c0_13 = arith.constant 0 : index
    %34 = vector.load %arg4[%c0_11, %c0_12, %c0_13] : memref<2x8x128xf32, #tpu.memory_space<vmem>>, vector<1x8x128xf32>
    %35 = vector.shape_cast %34 : vector<1x8x128xf32> to vector<8x128xf32>
    %36 = vector.shape_cast %14 : vector<16x128xf32> to vector<2x8x128xf32>
    %cst_14 = arith.constant dense<0.000000e+00> : vector<8x128xf32>
    %37 = vector.multi_reduction <add>, %36, %cst_14 [0] : vector<2x8x128xf32> to vector<8x128xf32>
    %38 = arith.addf %35, %37 : vector<8x128xf32>
    %c0_15 = arith.constant 0 : index
    %c0_16 = arith.constant 0 : index
    %c0_17 = arith.constant 0 : index
    %39 = vector.load %arg4[%c0_15, %c0_16, %c0_17] : memref<2x8x128xf32, #tpu.memory_space<vmem>>, vector<1x8x128xf32>
    %40 = vector.shape_cast %39 : vector<1x8x128xf32> to vector<8x128xf32>
    %41 = vector.shape_cast %38 : vector<8x128xf32> to vector<1x8x128xf32>
    tpu.vector_store %arg4[%c0_15, %c0_16, %c0_17], %41 {strides = array<i32>} : memref<2x8x128xf32, #tpu.memory_space<vmem>>, vector<1x8x128xf32>,
    %c1 = arith.constant 1 : index
    %c0_18 = arith.constant 0 : index
    %c0_19 = arith.constant 0 : index
    %42 = vector.load %arg4[%c1, %c0_18, %c0_19] : memref<2x8x128xf32, #tpu.memory_space<vmem>>, vector<1x8x128xf32>
    %43 = vector.shape_cast %42 : vector<1x8x128xf32> to vector<8x128xf32>
    %44 = vector.shape_cast %33 : vector<16x128xf32> to vector<2x8x128xf32>
    %cst_20 = arith.constant dense<0.000000e+00> : vector<8x128xf32>
    %45 = vector.multi_reduction <add>, %44, %cst_20 [0] : vector<2x8x128xf32> to vector<8x128xf32>
    %46 = arith.addf %43, %45 : vector<8x128xf32>
    %c1_21 = arith.constant 1 : index
    %c0_22 = arith.constant 0 : index
    %c0_23 = arith.constant 0 : index
    %47 = vector.load %arg4[%c1_21, %c0_22, %c0_23] : memref<2x8x128xf32, #tpu.memory_space<vmem>>, vector<1x8x128xf32>
    %48 = vector.shape_cast %47 : vector<1x8x128xf32> to vector<8x128xf32>
    %49 = vector.shape_cast %46 : vector<8x128xf32> to vector<1x8x128xf32>
    tpu.vector_store %arg4[%c1_21, %c0_22, %c0_23], %49 {strides = array<i32>} : memref<2x8x128xf32, #tpu.memory_space<vmem>>, vector<1x8x128xf32>,
    return
  }
  func.func @transform_0(%arg0: i32, %arg1: i32) -> (i32, i32) {
    %c1_i32 = arith.constant 1 : i32
    %0 = arith.muli %arg0, %c1_i32 : i32
    %1 = arith.addi %0, %arg1 : i32
    %c0_i32 = arith.constant 0 : i32
    %c0_i32_0 = arith.constant 0 : i32
    return %1, %c0_i32 : i32, i32
  }
  func.func @transform_1(%arg0: i32, %arg1: i32) -> (i32, i32) {
    %c1_i32 = arith.constant 1 : i32
    %0 = arith.muli %arg0, %c1_i32 : i32
    %1 = arith.addi %0, %arg1 : i32
    %c0_i32 = arith.constant 0 : i32
    %c0_i32_0 = arith.constant 0 : i32
    return %1, %c0_i32 : i32, i32
  }
  func.func @transform_2(%arg0: i32, %arg1: i32) -> (i32, i32, i32) {
    %c0_i32 = arith.constant 0 : i32
    %c0_i32_0 = arith.constant 0 : i32
    %c0_i32_1 = arith.constant 0 : i32
    return %arg0, %c0_i32, %c0_i32_0 : i32, i32, i32
  }
}

</mosaic_0001>

<bundles_post_ra>
// kernel: bce_focal_loss.1
= control target key start
LH: loop header
LB: loop body
LE: loop exit
PB: predicated region body
PF: predicated region fallthrough
CT: control target
= control target key end

     0   :  { %s471_s9 = smov 0   ;;  %s473_s10 = smov 0   ;;  %s552_s0 = inlined_call_operand.vmem [shape: f32[32,128], index: 0, kind: input, shape index: {}]   ;;  %s553_s1 = inlined_call_operand.vmem [shape: f32[32,128], index: 1, kind: input, shape index: {}]   ;;  %s554_s2 = inlined_call_operand.vmem [shape: f32[4,8,128], index: 2, kind: output, shape index: {}]  }
   0x1   :  { %s475_s11 = smov 0  }
   0x2 LB: > { %s24_s12 = sadd.s32 1, %s449_s10  ;;  %p383_p0 = scmp.ge.s32.totalorder %s453_s11, 1  ;;  %s453_s11 = sphi %s475_s11, %s12_s11   ;;  %s449_s10 = sphi %s473_s10, %s556_s10   ;;  %s445_s9 = sphi %s471_s9, %s555_s9  }
   0x3   : > { %p26_p1 = scmp.ge.s32.totalorder %s24_s12, 2  ;;  %p144_p2 = scmp.lt.s32.totalorder %s453_s11, 3 }
   0x5   : > { %s558_s12 = smov (%p26_p1, %s24_s12), 0  ;;  %p145_p3 = pnand %p383_p0, %p144_p2 }
   0x6   : > { %s384_s13 = sshll.u32 (!%p145_p3), %s445_s9, 1 }
   0x7   : > { %148 = sbr.rel (%p145_p3) target bundleno = 67 (0x43), region = 28  ;;  %p175_p4 = scmp.lt.s32.totalorder (!%p145_p3), %s384_s13, 3 }
   0xc   : > { %s560_s13 = smov (!%p175_p4, %s384_s13), 3  ;;  %v455_v2 = vmov 0.0  }
   0xd   : > { %s385_s14 = sshll.u32 %s560_s13, 3 }
   0xe   : > { %s178_s17 = scalar_lea.vmem %s552_s0, %s385_s14  ;;  %s495_s20 = scalar_lea.vmem %s554_s2, %s385_s14 }
   0xf   : > { %v497_v0 = vld [vmem:[%s178_s17] sm:$0xff]  ;;  %v499_v1 = vld [vmem:[%s178_s17 + $0x8] sm:$0xff]  ;;  %199 = vst [vmem:[%s495_s20] sm:$0xff] %v455_v2  ;;  %s186_s23 = scalar_lea.vmem %s553_s1, %s385_s14 }
  0x10   : > { %v205_v3 = vand.u32 2147483647, %v497_v0  ;;  %v206_v4 = vand.u32 2147483647, %v499_v1  ;;  %200 = vst [vmem:[%s495_s20 + $0x8] sm:$0xff] %v455_v2  ;;  %v514_v13 = vld [vmem:[%s186_s23] sm:$0xff] }
  0x11   : > { %v518_v16 = vld [vmem:[%s186_s23 + $0x8] sm:$0xff]  ;;  %v213_v17 = vmax.f32 %v497_v0, 0.0  ;;  %v215_v19 = vmul.f32 %v514_v13, %v497_v0  ;;  %v214_v22 = vmax.f32 %v499_v1, 0.0  ;;  %vm271_vm10 = vcmp.ge.f32.partialorder %v497_v0, 0.0 }
  0x12   : > { %v207_v5 = vsub.f32 0.0, %v205_v3  ;;  %v208_v6 = vsub.f32 0.0, %v206_v4  ;;  %v216_v23 = vmul.f32 %v518_v16, %v499_v1  ;;  %vm272_vm11 = vcmp.ge.f32.partialorder %v499_v1, 0.0 }
  0x13   : > { %v217_v27 = vsub.f32 %v213_v17, %v215_v19  ;;  %v287_v62 = vsub.f32 1.0, %v514_v13  ;;  %v288_v2 = vsub.f32 1.0, %v518_v16  ;;  %v284_v1 = vmul.f32 0.25, %v518_v16 }
  0x14   : > { %v209_v7 = vmul.f32 1.442695, %v207_v5  ;;  %v211_v8 = vmul.f32 1.442695, %v208_v6  ;;  %v218_v30 = vsub.f32 %v214_v22, %v216_v23  ;;  %v283_v6 = vmul.f32 0.25, %v514_v13 }
  0x16   : > { %419 = vpow2.f32 %v209_v7  ;;  %v293_v45 = vld [vmem:[%s495_s20] sm:$0xff] }
  0x17   : > { %421 = vpow2.f32 %v211_v8  ;;  %v390_v19 = vld [vmem:[%s495_s20 + $0x8] sm:$0xff] }
  0x1c   : > { %v508_v9 = vpop.eup %419 }
  0x1d   : > { %v510_v10 = vpop.eup %421  ;;  %v219_v11 = vadd.f32 1.0, %v508_v9  ;;  %v222_v12 = vmul.f32 -0.5, %v508_v9  ;;  %v225_v20 = vand.u32 2147483647, %v508_v9 }
  0x1e   : > { %v228_v14 = vadd.f32 1.0, %v510_v10  ;;  %v231_v15 = vmul.f32 -0.5, %v510_v10  ;;  %v234_v24 = vand.u32 2147483647, %v510_v10 }
  0x1f   : > { %423 = vlog2.f32 %v219_v11  ;;  %v223_v18 = vadd.f32 1.0, %v222_v12  ;;  %vm226_vm0 = vcmp.lt.f32.partialorder %v225_v20, 0.0004427343  ;;  %vm246_vm2 = vweird.f32 %v219_v11 }
  0x20   : > { %425 = vlog2.f32 %v228_v14  ;;  %v232_v21 = vadd.f32 1.0, %v231_v15  ;;  %vm235_vm1 = vcmp.lt.f32.partialorder %v234_v24, 0.0004427343  ;;  %v250_v37 = vand.u32 2147483647, %v219_v11 }
  0x21   : > { %427 = vrcp.f32 %v219_v11  ;;  %v224_v25 = vmul.f32 %v508_v9, %v223_v18  ;;  %v252_v40 = vand.u32 2147483648, %v219_v11  ;;  %v267_v44 = vand.u32 2147483648, %v228_v14 }
  0x22   : > { %429 = vrcp.f32 %v228_v14  ;;  %v233_v28 = vmul.f32 %v510_v10, %v232_v21  ;;  %vm261_vm4 = vweird.f32 %v228_v14  ;;  %v265_v47 = vand.u32 2147483647, %v228_v14 }
  0x23   : > { %v253_v50 = vor.u32 1.1754944e-38, %v252_v40  ;;  %vm251_vm7 = vcmp.eq.f32.partialorder %v250_v37, 8.507059e+37  ;;  %v268_v54 = vor.u32 1.1754944e-38, %v267_v44 }
  0x24   : > { %vm266_vm9 = vcmp.eq.f32.partialorder %v265_v47, 8.507059e+37 }
  0x25   : > { %v424_v26 = vpop.eup %423 }
  0x26   : > { %v426_v29 = vpop.eup %425  ;;  %v221_v31 = vmul.f32 0.6931472, %v424_v26 }
  0x27   : > { %v428_v32 = vpop.eup %427  ;;  %v230_v33 = vmul.f32 0.6931472, %v426_v29 }
  0x28   : > { %v430_v34 = vpop.eup %429  ;;  %v227_v35 = vsel %vm226_vm0, %v224_v25, %v221_v31  ;;  %v242_v36 = vmul.f32 %v428_v32, %v219_v11  ;;  %vm247_vm3 = vweird.f32 %v428_v32 }
  0x29   : > { %v236_v38 = vsel %vm235_vm1, %v233_v28, %v230_v33  ;;  %v237_v39 = vadd.f32 %v227_v35, %v217_v27  ;;  %v257_v41 = vmul.f32 %v430_v34, %v228_v14  ;;  %vm262_vm5 = vweird.f32 %v430_v34  ;;  %vm248_vm6 = vmor %vm246_vm2, %vm247_vm3 }
  0x2a   : > { %v238_v42 = vadd.f32 %v236_v38, %v218_v30  ;;  %v243_v43 = vsub.f32 1.0, %v242_v36  ;;  %vm263_vm8 = vmor %vm261_vm4, %vm262_vm5 }
  0x2b   : > { %v258_v46 = vsub.f32 1.0, %v257_v41 }
  0x2c   : > { %v294_v48 = vadd.f32 %v238_v42, %v237_v39  ;;  %v244_v49 = vmul.f32 %v428_v32, %v243_v43 }
  0x2d   : > { %v259_v51 = vmul.f32 %v430_v34, %v258_v46 }
  0x2e   : > { %v295_v52 = vadd.f32 %v294_v48, %v293_v45  ;;  %v245_v53 = vadd.f32 %v428_v32, %v244_v49 }
  0x2f   : > { %v260_v55 = vadd.f32 %v430_v34, %v259_v51 }
  0x30   : > { %296 = vst [vmem:[%s495_s20] sm:$0xff] %v295_v52  ;;  %v249_v56 = vsel %vm248_vm6, %v428_v32, %v245_v53 }
  0x31   : > { %v254_v57 = vsel %vm251_vm7, %v253_v50, %v249_v56  ;;  %v264_v58 = vsel %vm263_vm8, %v430_v34, %v260_v55 }
  0x32   : > { %v269_v59 = vsel %vm266_vm9, %v268_v54, %v264_v58  ;;  %v273_v60 = vmul.f32 %v508_v9, %v254_v57 }
  0x33   : > { %v274_v61 = vmul.f32 %v510_v10, %v269_v59 }
  0x34   : > { %v275_v63 = vsel %vm271_vm10, %v254_v57, %v273_v60 }
  0x35   : > { %v276_v3 = vsel %vm272_vm11, %v269_v59, %v274_v61  ;;  %v277_v4 = vsub.f32 1.0, %v275_v63  ;;  %v281_v5 = vmul.f32 %v275_v63, %v275_v63 }
  0x36   : > { %v278_v0 = vsub.f32 1.0, %v276_v3  ;;  %v282_v7 = vmul.f32 %v276_v3, %v276_v3 }
  0x37   : > { %v279_v8 = vmul.f32 %v277_v4, %v277_v4  ;;  %v289_v9 = vmul.f32 %v287_v62, %v281_v5 }
  0x38   : > { %v280_v11 = vmul.f32 %v278_v0, %v278_v0  ;;  %v290_v10 = vmul.f32 %v288_v2, %v282_v7 }
  0x39   : > { %v285_v12 = vmul.f32 %v283_v6, %v279_v8 }
  0x3a   : > { %v286_v14 = vmul.f32 %v284_v1, %v280_v11 }
  0x3b   : > { %v291_v15 = vadd.f32 %v289_v9, %v285_v12 }
  0x3c   : > { %v292_v17 = vadd.f32 %v290_v10, %v286_v14 }
  0x3e   : > { %v299_v18 = vadd.f32 %v292_v17, %v291_v15 }
  0x40   : > { %v300_v20 = vadd.f32 %v390_v19, %v299_v18 }
  0x42   : > { %391 = vst [vmem:[%s495_s20 + $0x8] sm:$0xff] %v300_v20 }
  0x43 PF: > { %s12_s11 = sadd.s32 1, %s453_s11   ;;  %s555_s9 = smov %s449_s10 }
  0x44   : > { %p9_p5 = scmp.ge.s32.totalorder %s12_s11, 4   ;;  %s556_s10 = smov %s558_s12 }
  0x46   :  { %11 = sbr.rel (!%p9_p5) target bundleno = 2 (0x2), region = 66 }

</bundles_post_ra>
